<compile_context>
chip_gen: v7x
topology: tpu7x:2x2x1
jax: 0.10.0
libtpu: 0.0.40
codegen_flags: <defaults>
</compile_context>

<pallas_src>
import functools

import jax
import jax.numpy as jnp
from jax.experimental import pallas as pl
from jax.experimental.pallas import tpu as pltpu


def attention_kernel(q_ref, k_ref, wq_ref, wk_ref, b_ref, h_ref,
                     vec_ref, w_ref):
    bb, T, H = k_ref.shape

    q = q_ref[...]                       # (bb, H)   (possibly bf16)
    k = k_ref[...]                       # (bb, T, H)
    wq = wq_ref[...]                     # (H, H)
    wk = wk_ref[...]                     # (H, H)
    b = b_ref[...]                       # (1, H) f32
    h = h_ref[...]                       # (1, H) f32, lane-dense

    # Flat 2-D matmul over all bb*T key rows (one dense MXU op; T % 8 == 0 so
    # this reshape is a pure sublane relabel).
    k2 = k.reshape(bb * T, H)

    # project_weight(cat(query, key)) == q @ Wq + key @ Wk + bias
    # (concat never materialized; bias folded into the per-batch query term).
    proj_qb = jnp.dot(q, wq, preferred_element_type=jnp.float32) + b           # (bb, H)
    proj_k = jnp.dot(k2, wk,
                     preferred_element_type=jnp.float32).reshape(bb, T, H)     # (bb, T, H)
    proj = jnp.maximum(proj_k + proj_qb[:, None, :], 0.0)                      # relu, f32

    # attention_alpha: VPU multiply + lane reduce (no N=1 MXU matvec), (bb, T)
    # lane-dense along T.
    alpha = jnp.sum(proj * h[None, :, :], axis=-1)                             # (bb, T)

    # Softmax over time (lane axis).  Exact divide: weights sum to 1 exactly.
    m = jnp.max(alpha, axis=-1, keepdims=True)                                 # (bb, 1)
    e = jnp.exp(alpha - m)                                                     # (bb, T)
    inv = 1.0 / jnp.sum(e, axis=-1, keepdims=True)                             # (bb, 1)
    w = e * inv                                                                # (bb, T)

    # Lane-dense weight store: one (1, 1, bb*T) slab per grid step; the wrapper
    # reshapes to (B, T, 1) (row-major element order is preserved).
    w_ref[...] = w.reshape(1, 1, bb * T)

    # attention_vec = sum_t key * weight.  Computed as the unnormalized sum
    # e @ key on the MXU (operand load handles the T transpose, no XLU
    # lane->sublane relayout of w), then scaled by the softmax reciprocal.
    acc = jnp.einsum('bqt,bth->bqh',
                     e.reshape(bb, 1, T).astype(k.dtype), k,
                     preferred_element_type=jnp.float32).reshape(bb, H)        # (bb, H)
    vec_ref[...] = (acc * inv).astype(vec_ref.dtype)


def prepare_params(W, b, h, mxu_dtype=None):
    """Hoisted once at parameter-load time (not per call).

    W: (H, 2H) torch nn.Linear weight, b: (H,), h: (H, 1).
    If mxu_dtype is given (e.g. bf16 on v6e/v7x), Wq/Wk are pre-cast here so
    no cast work happens inside the kernel; bias / h stay f32.
    """
    H = W.shape[0]
    Wt = W.T                    # (2H, H)
    Wq = Wt[:H]                 # (H, H)
    Wk = Wt[H:]                 # (H, H)
    if mxu_dtype is not None:
        Wq = Wq.astype(mxu_dtype)
        Wk = Wk.astype(mxu_dtype)
    b2 = b.reshape(1, H).astype(jnp.float32)
    h2 = h.reshape(1, H).astype(jnp.float32)   # lane-dense h (same element order as (H, 1))
    return Wq, Wk, b2, h2


@functools.partial(jax.jit, static_argnames=("batch_block", "mxu_dtype"))
def attention_pallas(query, key, Wq, Wk, b2, h2, *, batch_block=None, mxu_dtype=None):
    """query: (B, H), key: (B, T, H).

    Returns (attention_vec (B, H), attention_weight (B, T, 1)).

    batch_block=None  -> one grid step covering the whole batch (best at small B
                         and on 1-TC v5e/v6e).
    For large B on v7x pick batch_block = B // (2k), a multiple of 8, so both
    TensorCores get k steps with >=128 MXU rows (bb*T) each; keep
    bb*T*H*4 bytes <~ 128 KiB to avoid spilling the proj intermediate.
    """
    B, T, H = key.shape
    bb = B if batch_block is None else batch_block
    assert B % bb == 0, "batch_block must divide the batch size"
    assert bb == B or bb % 8 == 0, "batch_block must be B or a multiple of 8"
    assert T % 8 == 0, "time_step must be a multiple of 8 (sublane granularity)"

    if mxu_dtype is not None:
        # Pre-cast at the boundary: halves the key HBM->VMEM DMA bytes and
        # removes in-kernel cast work.  Accumulation stays f32 in the kernel.
        query = query.astype(mxu_dtype)
        key = key.astype(mxu_dtype)

    vec, w3 = pl.pallas_call(
        attention_kernel,
        grid=(B // bb,),
        in_specs=[
            pl.BlockSpec((bb, H), lambda i: (i, 0)),         # query (B, H)
            pl.BlockSpec((bb, T, H), lambda i: (i, 0, 0)),   # key   (B, T, H)
            pl.BlockSpec((H, H), lambda i: (0, 0)),          # Wq
            pl.BlockSpec((H, H), lambda i: (0, 0)),          # Wk
            pl.BlockSpec((1, H), lambda i: (0, 0)),          # bias  (1, H)
            pl.BlockSpec((1, H), lambda i: (0, 0)),          # h     (1, H)
        ],
        out_specs=(
            pl.BlockSpec((bb, H), lambda i: (i, 0)),         # attention_vec    (B, H)
            pl.BlockSpec((1, 1, bb * T), lambda i: (i, 0, 0)),  # weights, lane-dense
        ),
        out_shape=(
            jax.ShapeDtypeStruct((B, H), jnp.float32),
            jax.ShapeDtypeStruct((B // bb, 1, bb * T), jnp.float32),
        ),
        # VMEM footprint here is tiny (<< default scoped limit); re-derive and
        # set vmem_limit_bytes explicitly only when bb/T/H scale (v7x: 64 MiB).
        compiler_params=pltpu.CompilerParams(
            dimension_semantics=("parallel",)),              # v7x: shard batch over both TCs
    )(query, key, Wq, Wk, b2, h2)

    # Lane-dense (B//bb, 1, bb*T) -> module's (B, T, 1); pure reshape,
    # row-major element order is identical.
    return vec, w3.reshape(B, T, 1)


def attention_ref(query, key, W, b, h):
    """Plain-JAX reference mirroring the PyTorch forward (aggregate='sum')."""
    B, T, H = key.shape
    q = jnp.broadcast_to(query[:, None, :], (B, T, H))
    cat = jnp.concatenate([q, key], axis=-1)              # (B, T, 2H)
    proj = jnp.maximum(cat @ W.T + b, 0.0)                 # (B, T, H)
    alpha = proj @ h                                       # (B, T, 1)
    w = jax.nn.softmax(alpha, axis=1)
    vec = jnp.sum(key * w, axis=1)
    return vec, w


if __name__ == "__main__":
    B, T, H = 2, 8, 32   # batch, time_step, hidden (dim == hidden)

    key0 = jax.random.PRNGKey(0)
    k_q, k_k, k_W, k_b, k_h = jax.random.split(key0, 5)

    query = jax.random.normal(k_q, (B, H), dtype=jnp.float32)
    key_t = jax.random.normal(k_k, (B, T, H), dtype=jnp.float32)

    # Deterministic parameter init (shapes follow nn.Linear(2H, H) and Parameter(H, 1)).
    W = jax.random.normal(k_W, (H, 2 * H), dtype=jnp.float32) * 0.1   # Linear weight (out, in)
    b = jax.random.normal(k_b, (H,), dtype=jnp.float32) * 0.1         # Linear bias
    h = jax.random.uniform(k_h, (H, 1), dtype=jnp.float32)            # torch.rand(hidden, 1)

    # Parameter prep hoisted out of the per-call path.
    Wq, Wk, b2, h2 = prepare_params(W, b, h, mxu_dtype=None)

    # batch_block=None -> single grid step (no per-step overhead at B=2).
    # mxu_dtype=jnp.bfloat16 is the recommended setting on v6e/v7x once B/T/H grow.
    vec, weight = attention_pallas(query, key_t, Wq, Wk, b2, h2,
                                   batch_block=None, mxu_dtype=None)
    vec = jax.block_until_ready(vec)
    weight = jax.block_until_ready(weight)

    vec_r, weight_r = attention_ref(query, key_t, W, b, h)
    assert vec.shape == (B, H) and weight.shape == (B, T, 1)
    assert jnp.allclose(vec, vec_r, atol=2e-3, rtol=2e-3)
    assert jnp.allclose(weight, weight_r, atol=2e-3, rtol=2e-3)

    print("KERNEL_OK")
</pallas_src>

<mosaic_0001>
module attributes {stable_mosaic.version = 11 : i64} {
  func.func @attention_kernel(%arg0: i32, %arg1: memref<2x32xf32, #tpu.memory_space<vmem>>, %arg2: memref<2x8x32xf32, #tpu.memory_space<vmem>>, %arg3: memref<32x32xf32, #tpu.memory_space<vmem>>, %arg4: memref<32x32xf32, #tpu.memory_space<vmem>>, %arg5: memref<1x32xf32, #tpu.memory_space<vmem>>, %arg6: memref<1x32xf32, #tpu.memory_space<vmem>>, %arg7: memref<2x32xf32, #tpu.memory_space<vmem>>, %arg8: memref<1x1x16xf32, #tpu.memory_space<vmem>>) attributes {dimension_semantics = [#tpu.dimension_semantics<parallel>], iteration_bounds = array<i64: 1>, scalar_prefetch = 0 : i64, scratch_operands = 0 : i64, tpu.core_type = #tpu.core_type<tc>, window_params = [{transform_indices = @transform_0, window_bounds = array<i64: 2, 32>}, {transform_indices = @transform_1, window_bounds = array<i64: 2, 8, 32>}, {pipeline_mode = #tpu.pipeline_mode<synchronous>, transform_indices = @transform_2, window_bounds = array<i64: 32, 32>}, {pipeline_mode = #tpu.pipeline_mode<synchronous>, transform_indices = @transform_3, window_bounds = array<i64: 32, 32>}, {pipeline_mode = #tpu.pipeline_mode<synchronous>, transform_indices = @transform_4, window_bounds = array<i64: 1, 32>}, {pipeline_mode = #tpu.pipeline_mode<synchronous>, transform_indices = @transform_5, window_bounds = array<i64: 1, 32>}, {transform_indices = @transform_6, window_bounds = array<i64: 2, 32>}, {transform_indices = @transform_7, window_bounds = array<i64: 1, 1, 16>}]} {
    %c0 = arith.constant 0 : index
    %c0_0 = arith.constant 0 : index
    %0 = vector.load %arg1[%c0, %c0_0] : memref<2x32xf32, #tpu.memory_space<vmem>>, vector<2x32xf32>
    %c0_1 = arith.constant 0 : index
    %c0_2 = arith.constant 0 : index
    %c0_3 = arith.constant 0 : index
    %1 = vector.load %arg2[%c0_1, %c0_2, %c0_3] : memref<2x8x32xf32, #tpu.memory_space<vmem>>, vector<2x8x32xf32>
    %c0_4 = arith.constant 0 : index
    %c0_5 = arith.constant 0 : index
    %2 = vector.load %arg3[%c0_4, %c0_5] : memref<32x32xf32, #tpu.memory_space<vmem>>, vector<32x32xf32>
    %c0_6 = arith.constant 0 : index
    %c0_7 = arith.constant 0 : index
    %3 = vector.load %arg4[%c0_6, %c0_7] : memref<32x32xf32, #tpu.memory_space<vmem>>, vector<32x32xf32>
    %c0_8 = arith.constant 0 : index
    %c0_9 = arith.constant 0 : index
    %4 = vector.load %arg5[%c0_8, %c0_9] : memref<1x32xf32, #tpu.memory_space<vmem>>, vector<1x32xf32>
    %c0_10 = arith.constant 0 : index
    %c0_11 = arith.constant 0 : index
    %5 = vector.load %arg6[%c0_10, %c0_11] : memref<1x32xf32, #tpu.memory_space<vmem>>, vector<1x32xf32>
    %6 = vector.shape_cast %1 : vector<2x8x32xf32> to vector<16x32xf32>
    %cst = arith.constant dense<0.000000e+00> : vector<2x32xf32>
    %7 = tpu.matmul %0, %2, %cst {dimension_numbers = #tpu.dot_dimension_numbers<[1], [0], [0], [1], [0, 0, 1, 1], [], []>} : vector<2x32xf32>, vector<32x32xf32>, vector<2x32xf32> -> vector<2x32xf32>
    %8 = vector.broadcast %4 : vector<1x32xf32> to vector<2x32xf32>
    %9 = arith.addf %7, %8 : vector<2x32xf32>
    %cst_12 = arith.constant dense<0.000000e+00> : vector<16x32xf32>
    %10 = tpu.matmul %6, %3, %cst_12 {dimension_numbers = #tpu.dot_dimension_numbers<[1], [0], [0], [1], [0, 0, 1, 1], [], []>} : vector<16x32xf32>, vector<32x32xf32>, vector<16x32xf32> -> vector<16x32xf32>
    %11 = vector.shape_cast %10 : vector<16x32xf32> to vector<2x8x32xf32>
    %12 = vector.shape_cast %9 : vector<2x32xf32> to vector<2x1x32xf32>
    %13 = vector.broadcast %12 : vector<2x1x32xf32> to vector<2x8x32xf32>
    %14 = arith.addf %11, %13 : vector<2x8x32xf32>
    %cst_13 = arith.constant 0.000000e+00 : f32
    %15 = vector.broadcast %cst_13 : f32 to vector<2x8x32xf32>
    %16 = arith.maximumf %14, %15 : vector<2x8x32xf32>
    %17 = vector.shape_cast %5 : vector<1x32xf32> to vector<1x1x32xf32>
    %18 = vector.broadcast %17 : vector<1x1x32xf32> to vector<2x8x32xf32>
    %19 = arith.mulf %16, %18 : vector<2x8x32xf32>
    %cst_14 = arith.constant dense<0.000000e+00> : vector<2x8xf32>
    %20 = vector.multi_reduction <add>, %19, %cst_14 [2] : vector<2x8x32xf32> to vector<2x8xf32>
    %cst_15 = arith.constant dense<0xFF800000> : vector<2xf32>
    %21 = vector.multi_reduction <maximumf>, %20, %cst_15 [1] : vector<2x8xf32> to vector<2xf32>
    %22 = vector.shape_cast %21 : vector<2xf32> to vector<2x1xf32>
    %23 = vector.broadcast %22 : vector<2x1xf32> to vector<2x8xf32>
    %24 = arith.subf %20, %23 : vector<2x8xf32>
    %25 = math.exp %24 : vector<2x8xf32>
    %cst_16 = arith.constant dense<0.000000e+00> : vector<2xf32>
    %26 = vector.multi_reduction <add>, %25, %cst_16 [1] : vector<2x8xf32> to vector<2xf32>
    %27 = vector.shape_cast %26 : vector<2xf32> to vector<2x1xf32>
    %cst_17 = arith.constant 1.000000e+00 : f32
    %28 = vector.broadcast %cst_17 : f32 to vector<2x1xf32>
    %29 = arith.divf %28, %27 : vector<2x1xf32>
    %30 = vector.broadcast %29 : vector<2x1xf32> to vector<2x8xf32>
    %31 = arith.mulf %25, %30 : vector<2x8xf32>
    %32 = vector.shape_cast %31 : vector<2x8xf32> to vector<1x1x16xf32>
    %c0_18 = arith.constant 0 : index
    %c0_19 = arith.constant 0 : index
    %c0_20 = arith.constant 0 : index
    %33 = vector.load %arg8[%c0_18, %c0_19, %c0_20] : memref<1x1x16xf32, #tpu.memory_space<vmem>>, vector<1x1x16xf32>
    tpu.vector_store %arg8[%c0_18, %c0_19, %c0_20], %32 {strides = array<i32>} : memref<1x1x16xf32, #tpu.memory_space<vmem>>, vector<1x1x16xf32>,
    %34 = vector.shape_cast %25 : vector<2x8xf32> to vector<2x1x8xf32>
    "tpu.trace_start"() <{level = 10 : i32, message = "bqt,bth->bqh"}> : () -> ()
    %cst_21 = arith.constant dense<0.000000e+00> : vector<2x1x32xf32>
    %35 = tpu.matmul %34, %1, %cst_21 {dimension_numbers = #tpu.dot_dimension_numbers<[2], [1], [1], [2], [0, 0, 0, 1, 1, 2], [0], [0]>} : vector<2x1x8xf32>, vector<2x8x32xf32>, vector<2x1x32xf32> -> vector<2x1x32xf32>
    "tpu.trace_stop"() : () -> ()
    %36 = vector.shape_cast %35 : vector<2x1x32xf32> to vector<2x32xf32>
    %37 = vector.broadcast %29 : vector<2x1xf32> to vector<2x32xf32>
    %38 = arith.mulf %36, %37 : vector<2x32xf32>
    %c0_22 = arith.constant 0 : index
    %c0_23 = arith.constant 0 : index
    %39 = vector.load %arg7[%c0_22, %c0_23] : memref<2x32xf32, #tpu.memory_space<vmem>>, vector<2x32xf32>
    tpu.vector_store %arg7[%c0_22, %c0_23], %38 {strides = array<i32>} : memref<2x32xf32, #tpu.memory_space<vmem>>, vector<2x32xf32>,
    return
  }
  func.func @transform_0(%arg0: i32) -> (i32, i32) {
    %c0_i32 = arith.constant 0 : i32
    %c0_i32_0 = arith.constant 0 : i32
    return %arg0, %c0_i32 : i32, i32
  }
  func.func @transform_1(%arg0: i32) -> (i32, i32, i32) {
    %c0_i32 = arith.constant 0 : i32
    %c0_i32_0 = arith.constant 0 : i32
    %c0_i32_1 = arith.constant 0 : i32
    return %arg0, %c0_i32, %c0_i32_0 : i32, i32, i32
  }
  func.func @transform_2(%arg0: i32) -> (i32, i32) {
    %c0_i32 = arith.constant 0 : i32
    %c0_i32_0 = arith.constant 0 : i32
    %c0_i32_1 = arith.constant 0 : i32
    return %c0_i32, %c0_i32_0 : i32, i32
  }
  func.func @transform_3(%arg0: i32) -> (i32, i32) {
    %c0_i32 = arith.constant 0 : i32
    %c0_i32_0 = arith.constant 0 : i32
    %c0_i32_1 = arith.constant 0 : i32
    return %c0_i32, %c0_i32_0 : i32, i32
  }
  func.func @transform_4(%arg0: i32) -> (i32, i32) {
    %c0_i32 = arith.constant 0 : i32
    %c0_i32_0 = arith.constant 0 : i32
    %c0_i32_1 = arith.constant 0 : i32
    return %c0_i32, %c0_i32_0 : i32, i32
  }
  func.func @transform_5(%arg0: i32) -> (i32, i32) {
    %c0_i32 = arith.constant 0 : i32
    %c0_i32_0 = arith.constant 0 : i32
    %c0_i32_1 = arith.constant 0 : i32
    return %c0_i32, %c0_i32_0 : i32, i32
  }
  func.func @transform_6(%arg0: i32) -> (i32, i32) {
    %c0_i32 = arith.constant 0 : i32
    %c0_i32_0 = arith.constant 0 : i32
    return %arg0, %c0_i32 : i32, i32
  }
  func.func @transform_7(%arg0: i32) -> (i32, i32, i32) {
    %c0_i32 = arith.constant 0 : i32
    %c0_i32_0 = arith.constant 0 : i32
    %c0_i32_1 = arith.constant 0 : i32
    return %arg0, %c0_i32, %c0_i32_0 : i32, i32, i32
  }
}

</mosaic_0001>

<bundles_post_ra>
// kernel: attention_pallas.1
= control target key start
LH: loop header
LB: loop body
LE: loop exit
PB: predicated region body
PF: predicated region fallthrough
CT: control target
= control target key end

     0   :  { %13 = vsyncpa [#allocation3], 0  ;;  %s943_s0 = inlined_call_operand.hbm [shape: f32[2,32], index: 0, kind: input, shape index: {}]   ;;  %s944_s1 = inlined_call_operand.hbm [shape: f32[2,8,32], index: 1, kind: input, shape index: {}]   ;;  %s945_s2 = inlined_call_operand.hbm [shape: f32[32,32], index: 2, kind: input, shape index: {}]   ;;  %s946_s3 = inlined_call_operand.hbm [shape: f32[32,32], index: 3, kind: input, shape index: {}]   ;;  %s947_s4 = inlined_call_operand.vmem [shape: f32[1,32], index: 4, kind: input, shape index: {}]   ;;  %s948_s5 = inlined_call_operand.vmem [shape: f32[1,32], index: 5, kind: input, shape index: {}]   ;;  %s949_s6 = inlined_call_operand.hbm [shape: f32[2,32], index: 6, kind: output, shape index: {0}]   ;;  %s950_s7 = inlined_call_operand.vmem [shape: f32[1,1,16], index: 7, kind: output, shape index: {1}]  }
   0x1   :  { %14 = vsyncpa [#allocation6], 0 }
   0x2   :  { %15 = vsyncpa [#allocation9], 0 }
   0x3   :  { %16 = vsyncpa [#allocation4], 0  ;;  %s782_s24 = smov [#allocation5]   ;;  %s664_s28 = scalar_lea.hbm %s944_s1, 256 }
   0x4   :  { %s32_s25 = sshll.u32 %s782_s24, 4  ;;  %p665_p0 = scmp.ne.s32.totalorder %s944_s1, %s664_s28  ;;  %s33_s25 = int_to_ptr.vmem [resolvable:$true] %s32_s25 }
   0x5   :  { %p668_p1 = scmp.lt.u32.totalorder %s664_s28, %s944_s1 }
   0x7   :  { %p670_p2 = pnand %p668_p1, %p665_p0 }
   0x9   :  { %673 = shalt.err (!%p670_p2)
}
   0xa   :  { %s674_s10 = scalar_lea.vmem %s33_s25, 256  ;;  %p679_p4 = scmp.lt.s32.totalorder %s33_s25, %s33_s25 }
   0xb   :  { %p675_p3 = scmp.ne.s32.totalorder %s33_s25, %s674_s10  ;;  %p680_p5 = scmp.lt.s32.totalorder %s674_s10, %s674_s10 }
   0xd   :  { %p681_p6 = por %p680_p5, %p679_p4 }
   0xf   :  { %p682_p7 = pnand %p681_p6, %p675_p3 }
  0x11   :  { %685 = shalt.err (!%p682_p7)
}
  0x12   :  { %s783_s11 = smov 128   ;;  %s784_s12 = smov 8  }
  0x13   :  { %38 = dma.hbm_to_vmem [thread:$0]  %s944_s1, 256, %s33_s25, [#allocation6], %s783_s11, %s783_s11, %s784_s12  }
  0x14   :  { %s785_s15 = smov [#allocation2]   ;;  %s786_s17 = smov [#allocation7]  }
  0x15   :  { %s23_s16 = sshll.u32 %s785_s15, 4  ;;  %s44_s18 = sshll.u32 %s786_s17, 4  ;;  %s24_s16 = int_to_ptr.vmem [resolvable:$true] %s23_s16  ;;  %s45_s18 = int_to_ptr.vmem [resolvable:$true] %s44_s18 }
  0x16   :  { %s686_s21 = scalar_lea.hbm %s943_s0, 32 }
  0x17   :  { %p687_p8 = scmp.ne.s32.totalorder %s943_s0, %s686_s21  ;;  %p690_p9 = scmp.lt.u32.totalorder %s686_s21, %s943_s0 }
  0x19   :  { %p692_p10 = pnand %p690_p9, %p687_p8 }
  0x1b   :  { %695 = shalt.err (!%p692_p10)
}
  0x1c   :  { %s696_s1 = scalar_lea.vmem %s24_s16, 32  ;;  %p701_p12 = scmp.lt.s32.totalorder %s24_s16, %s24_s16 }
  0x1d   :  { %p697_p11 = scmp.ne.s32.totalorder %s24_s16, %s696_s1  ;;  %p702_p13 = scmp.lt.s32.totalorder %s696_s1, %s696_s1 }
  0x1f   :  { %p703_p0 = por %p702_p13, %p701_p12 }
  0x21   :  { %p704_p1 = pnand %p703_p0, %p697_p11 }
  0x23   :  { %707 = shalt.err (!%p704_p1)
}
  0x24   :  { %26 = dma.hbm_to_vmem [thread:$0]  %s943_s0, 32, %s24_s16, [#allocation3]  }
  0x25   :  { %s708_s30 = scalar_lea.hbm %s945_s2, 512 }
  0x26   :  { %p709_p2 = scmp.ne.s32.totalorder %s945_s2, %s708_s30  ;;  %p712_p3 = scmp.lt.u32.totalorder %s708_s30, %s945_s2 }
  0x28   :  { %p714_p4 = pnand %p712_p3, %p709_p2 }
  0x2a   :  { %717 = shalt.err (!%p714_p4)
}
  0x2b   :  { %s718_s14 = scalar_lea.vmem %s45_s18, 512  ;;  %p723_p6 = scmp.lt.s32.totalorder %s45_s18, %s45_s18 }
  0x2c   :  { %p719_p5 = scmp.ne.s32.totalorder %s45_s18, %s718_s14  ;;  %p724_p7 = scmp.lt.s32.totalorder %s718_s14, %s718_s14 }
  0x2e   :  { %p725_p8 = por %p724_p7, %p723_p6 }
  0x30   :  { %p726_p9 = pnand %p725_p8, %p719_p5 }
  0x32   :  { %729 = shalt.err (!%p726_p9)
}
  0x33   :  { %50 = dma.hbm_to_vmem [thread:$0]  %s945_s2, 512, %s45_s18, [#allocation6], %s783_s11, %s783_s11, %s784_s12  }
  0x34   :  { %s787_s16 = smov [#allocation8]   ;;  %s730_s21 = scalar_lea.hbm %s946_s3, 512 }
  0x35   :  { %s56_s17 = sshll.u32 %s787_s16, 4  ;;  %p731_p10 = scmp.ne.s32.totalorder %s946_s3, %s730_s21  ;;  %s57_s17 = int_to_ptr.vmem [resolvable:$true] %s56_s17 }
  0x36   :  { %p734_p11 = scmp.lt.u32.totalorder %s730_s21, %s946_s3 }
  0x38   :  { %p736_p12 = pnand %p734_p11, %p731_p10 }
  0x3a   :  { %739 = shalt.err (!%p736_p12)
}
  0x3b   :  { %s740_s1 = scalar_lea.vmem %s57_s17, 512  ;;  %p745_p0 = scmp.lt.s32.totalorder %s57_s17, %s57_s17 }
  0x3c   :  { %p741_p13 = scmp.ne.s32.totalorder %s57_s17, %s740_s1  ;;  %p746_p1 = scmp.lt.s32.totalorder %s740_s1, %s740_s1 }
  0x3e   :  { %p747_p2 = por %p746_p1, %p745_p0 }
  0x40   :  { %p748_p3 = pnand %p747_p2, %p741_p13 }
  0x42   :  { %751 = shalt.err (!%p748_p3)
}
  0x43   :  { %62 = dma.hbm_to_vmem [thread:$0]  %s946_s3, 512, %s57_s17, [#allocation9], %s783_s11, %s783_s11, %s784_s12  }
  0x44   :  { %774 = dma.done.wait [#allocation3], 32  }
  0x45   :  { %775 = vsyncadd [#allocation3], 4294967264 }
  0x46   :  { %776 = dma.done.wait [#allocation6], 768  }
  0x47   :  { %777 = vsyncadd [#allocation6], 4294966528 }
  0x48   :  { %778 = dma.done.wait [#allocation9], 512  }
  0x49   :  { %779 = vsyncadd [#allocation9], 4294966784  ;;  %v788_v0 = vmov 0.0|0.0   ;;  %vm789_vm0 = vmmov 0   ;;  %v790_v1 = vmov 0.0   ;;  %v82_v2 = vld [vmem:[#allocation7] sm:$0xff]  ;;  %v257_v19 = vlaneseq }
  0x4a   :  { %630 = vmatprep.subr.bf16.mxu0 %v788_v0  ;;  %606 = vmatprep.mubr.msk.f32.mxu0 %vm789_vm0, %v790_v1  ;;  %v83_v3 = vld [vmem:[#allocation7 + $0x8] sm:$0xff]  ;;  %v84_v4 = vld [vmem:[#allocation7 + $0x10] sm:$0xff]  ;;  %v85_v6 = vld [vmem:[#allocation7 + $0x18] sm:$0xff]  ;;  %vm98_vm1 = vcmask 261120   ;;  %v791_v17 = vmov 1966171168  }
  0x4b   :  { %v631_v5 = vpack.c.bf16 %v83_v3, %v82_v2  ;;  %v86_v7 = vld [vmem:[#allocation8] sm:$0xff]  ;;  %v87_v8 = vld [vmem:[#allocation8 + $0x8] sm:$0xff]  ;;  %v88_v10 = vld [vmem:[#allocation8 + $0x10] sm:$0xff]  ;;  %v634_v12 = vpack.c.bf16 %v85_v6, %v84_v4  ;;  %v255_v18 = vunpack.c.l.s4 %v791_v17  ;;  %v897_v21 = vshrl.u32 %v257_v19, 7 }
  0x4c   :  { %v636_v9 = vpack.c.bf16 %v87_v8, %v86_v7  ;;  %v89_v11 = vld [vmem:[#allocation8 + $0x18] sm:$0xff]  ;;  %v80_v14 = vld [vmem:[#allocation5] sm:$0xff]  ;;  %v79_v15 = vld [vmem:[#allocation2] sm:$0x3]  ;;  %v909_v45 = vand.u32 127, %v257_v19  ;;  %vm316_vm2 = vcmask 1041409  }
  0x4d   :  { %632 = vmatpush3.bf16.msra.mxu0 %v631_v5  ;;  %v640_v13 = vpack.c.bf16 %v89_v11, %v88_v10  ;;  %617 = vmatprep.mubr.msk.f32.mxu1 %vm98_vm1, %v80_v14  ;;  %v81_v16 = vld [vmem:[#allocation5 + $0x8] sm:$0xff]  ;;  %v256_v20 = vunpack.c.0.s8 %v255_v18  ;;  %v576_v22 = vld [vmem:[%s947_s4] ss:$0 sm:$0xff]  ;;  %v278_v29 = vsub.s32 0, %v897_v21  ;;  %vm319_vm3 = vcmask 58368   ;;  %s793_s4 = smov [#allocation10]  }
  0x4e   :  { %633 = vmatprep.subr.bf16.mxu0 %v788_v0  ;;  %637 = vmatprep.subr.bf16.mxu1 %v636_v9  ;;  %v580_v37 = vld [vmem:[%s948_s5] ss:$0 sm:$0xff]  ;;  %v913_v47 = vsub.s32 %v909_v45, %v897_v21  ;;  %v792_v53 = vmov 0   ;;  %v330_v54 = vsub.s32 1, %v897_v21  ;;  %vm398_vm4 = vcmask 64512   ;;  %s561_s5 = sshll.u32 %s793_s4, 4  ;;  %s562_s5 = int_to_ptr.vmem [resolvable:$true] %s561_s5 }
  0x4f   :  { %639 = vmatpush3.bf16.msra.mxu1 %v636_v9  ;;  %v259_v23 = vsub.s32 %v256_v20, %v897_v21  ;;  %657 = vset.pattern.permute.xlu0 %v792_v53  ;;  %vm553_vm5 = vcmask 254976   ;;  %s752_s27 = scalar_lea.vmem %s562_s5, 32  ;;  %p757_p5 = scmp.lt.s32.totalorder %s562_s5, %s562_s5 }
  0x50   :  { %641 = vmatprep.subr.bf16.mxu1 %v640_v13  ;;  %656 = vset.pattern.permute.xlu1 %v792_v53  ;;  %p753_p4 = scmp.ne.s32.totalorder %s562_s5, %s752_s27  ;;  %p758_p6 = scmp.lt.s32.totalorder %s752_s27, %s752_s27 }
  0x51   :  { %635 = vmatpush3.bf16.msra.mxu0 %v634_v12 }
  0x52   :  { %620 = vmatprep.subr.mxu0 %v790_v1  ;;  %p759_p7 = por %p758_p6, %p757_p5 }
  0x53   :  { %643 = vmatpush3.bf16.msra.mxu1 %v640_v13 }
  0x54   :  { %607 = vmatmul.mubr.msk.f32.vlgmr.msra.gmra.mrb[0].mxu0 %vm98_vm1, %v79_v15  ;;  %625 = vmatprep.subr.mxu1 %v790_v1  ;;  %p760_p8 = pnand %p759_p7, %p753_p4 }
  0x55   :  { %621 = vmatpush3.msra.mxu0 %v80_v14  ;;  %622 = vmatprep.mubr.msk.f32.mxu0 %vm789_vm0, %v790_v1 }
  0x56   :  { %618 = vmatmul.mubr.msk.f32.vlgmr.msra.gmra.mrb[0].mxu1 %vm98_vm1, %v81_v16 }
  0x57   :  { %626 = vmatpush3.msra.mxu1 %v81_v16  ;;  %627 = vmatprep.mubr.msk.f32.mxu1 %vm789_vm0, %v790_v1 }
 0x127   :  { %v168_v24 = vpop.f32.mrb[0].mxu0 }
 0x128   :  { %v169_v25 = vadd.f32 %v576_v22, %v168_v24  ;;  %v608_v26 = vpop.f32.mrb[1].mxu0 }
 0x129   :  { %v619_v27 = vpop.f32.mrb[0].mxu1 }
 0x12a   :  { %v260_v28 = vrot.slane %v169_v25, %v259_v23  ;;  %v244_v30 = vpop.f32.mrb[1].mxu1 }
 0x12c   :  { %v261_v31 = vcombine.high %v260_v28, %v260_v28  ;;  %v268_v32 = vrot.slane %v260_v28, %v259_v23 }
 0x12e   :  { %v275_v33 = vrot.slane %v261_v31, %v259_v23  ;;  %v279_v34 = vrot.slane %v268_v32, %v278_v29 }
 0x130   :  { %v283_v35 = vrot.slane %v275_v33, %v278_v29  ;;  %v286_v36 = vadd.f32 %v279_v34, %v244_v30 }
 0x132   :  { %v287_v38 = vadd.f32 %v619_v27, %v283_v35  ;;  %v288_v39 = vmax.f32 %v286_v36, 0.0 }
 0x134   :  { %v289_v40 = vmax.f32 %v287_v38, 0.0  ;;  %v296_v41 = vmul.f32 %v580_v37, %v288_v39 }
 0x136   :  { %v298_v42 = vsel %vm98_vm1, %v296_v41, 0.0  ;;  %v297_v43 = vmul.f32 %v580_v37, %v289_v40 }
 0x137   :  { %299 = vadd.xlane.f32.xlu0 %v298_v42 }
 0x138   :  { %v301_v44 = vsel %vm98_vm1, %v297_v43, 0.0 }
 0x13b   :  { %302 = vadd.xlane.f32.xlu0 %v301_v44 }
 0x1c4   :  { %v300_v46 = vpop.xlane.xlu0 %299 }
 0x1c5   :  { %v311_v49 = vrot.slane %v300_v46, %v913_v47 }
 0x1c8   :  { %v303_v48 = vpop.xlane.xlu0 %302 }
 0x1c9   :  { %v315_v50 = vrot.slane %v303_v48, %v913_v47 }
 0x1cb   :  { %v317_v51 = vsel %vm316_vm2, %v315_v50, %v311_v49 }
 0x1cc   :  { %v320_v52 = vsel %vm319_vm3, %v317_v51, -inf }
 0x1cd   :  { %321 = vmax.xlane.f32.xlu1 %v320_v52 }
 0x25a   :  { %v322_v55 = vpop.xlane.xlu1 %321 }
 0x25b   :  { %v327_v56 = vrot.slane %v322_v55, %v278_v29  ;;  %v331_v57 = vrot.slane %v322_v55, %v330_v54 }
 0x25d   :  { %v334_v58 = vsub.f32 %v300_v46, %v327_v56  ;;  %v335_v59 = vsub.f32 %v303_v48, %v331_v57 }
 0x25f   :  { %v336_v60 = vmul.f32 1.442695, %v334_v58  ;;  %v338_v61 = vmul.f32 1.442695, %v335_v59 }
 0x261   :  { %658 = vpow2.f32 %v336_v60 }
 0x262   :  { %660 = vpow2.f32 %v338_v61 }
 0x26b   :  { %v659_v62 = vpop.eup %658 }
 0x26c   :  { %v661_v63 = vpop.eup %660  ;;  %343 = vperm.xlu0 %657, %v659_v62  }
 0x26d   :  { %346 = vperm.xlu1 %656, %v661_v63  }
 0x2eb   :  { %v344_v0 = vpop.permute.xlu0 %343 }
 0x2ec   :  { %v347_v1 = vpop.permute.xlu1 %346  ;;  %v351_v2 = vrot.slane %v344_v0, %v913_v47 }
 0x2ed   :  { %v355_v3 = vrot.slane %v347_v1, %v913_v47 }
 0x2ee   :  { %623 = vmatmul.mubr.msk.f32.vlgmr.msra.gmra.mrb[2].mxu0 %vm398_vm4, %v351_v2 }
 0x2ef   :  { %628 = vmatmul.mubr.msk.f32.vlgmr.msra.gmra.mrb[2].mxu1 %vm398_vm4, %v355_v3  ;;  %v356_v4 = vsel %vm316_vm2, %v355_v3, %v351_v2 }
 0x2f0   :  { %v358_v5 = vsel %vm319_vm3, %v356_v4, 0.0 }
 0x2f1   :  { %359 = vadd.xlane.f32.xlu1 %v358_v5 }
 0x37e   :  { %v360_v6 = vpop.xlane.xlu1 %359 }
 0x37f   :  { %662 = vrcp.f32 %v360_v6 }
 0x389   :  { %v663_v7 = vpop.eup %662 }
 0x38a   :  { %v367_v8 = vrot.slane %v663_v7, %v278_v29  ;;  %v371_v10 = vrot.slane %v663_v7, %v330_v54  ;;  %v543_v13 = vrot.slane %v663_v7, 1 }
 0x38c   :  { %v374_v9 = vmul.f32 %v659_v62, %v367_v8  ;;  %v375_v11 = vmul.f32 %v661_v63, %v371_v10 }
 0x38e   :  { %379 = vperm.xlu0 %657, %v374_v9  }
 0x392   :  { %382 = vperm.xlu0 %657, %v375_v11  }
 0x3c1   :  { %v467_v12 = vpop.f32.mrb[2].mxu0 }
 0x3c2   :  { %v546_v14 = vmul.f32 %v663_v7, %v467_v12  ;;  %v539_v15 = vpop.f32.mrb[2].mxu1  ;;  %v624_v16 = vpop.f32.mrb[3].mxu0 }
 0x3c3   :  { %v547_v17 = vmul.f32 %v543_v13, %v539_v15  ;;  %v629_v18 = vpop.f32.mrb[3].mxu1 }
 0x3c5   :  { %v550_v19 = vrot.slane %v547_v17, 7 }
 0x3c7   :  { %v551_v20 = vsel %vm316_vm2, %v550_v19, %v546_v14 }
 0x3c8   :  { %554 = vst.msk [vmem:[#allocation10] sm:$0x3] %vm553_vm5, %v551_v20 }
 0x3c9   :  { %763 = shalt.err (!%p760_p8)
}
 0x3ca   :  { %s764_s30 = scalar_lea.hbm %s949_s6, 32 }
 0x3cb   :  { %p765_p9 = scmp.ne.s32.totalorder %s949_s6, %s764_s30  ;;  %p768_p10 = scmp.lt.u32.totalorder %s764_s30, %s949_s6 }
 0x3cd   :  { %p770_p11 = pnand %p768_p10, %p765_p9 }
 0x3cf   :  { %773 = shalt.err (!%p770_p11)
}
 0x3d0   :  { %564 = dma.vmem_to_hbm [thread:$0]  %s562_s5, 32, %s949_s6, [#allocation4]   ;;  %v388_v22 = vadd.s32 4294967288, %v909_v45  ;;  %vm393_vm6 = vcmask 130112   ;;  %vm396_vm7 = vcmask 122880  }
 0x3d2   :  { %v391_v24 = vsub.s32 %v388_v22, %v897_v21 }
 0x40d   :  { %v380_v23 = vpop.permute.xlu0 %379 }
 0x40e   :  { %v387_v26 = vrot.slane %v380_v23, %v913_v47 }
 0x411   :  { %v383_v25 = vpop.permute.xlu0 %382 }
 0x412   :  { %v392_v27 = vrot.slane %v383_v25, %v391_v24 }
 0x414   :  { %v394_v28 = vsel %vm393_vm6, %v392_v27, %v387_v26 }
 0x415   :  { %397 = vst.msk [vmem:[%s950_s7] sm:$0x1] %vm396_vm7, %v394_v28 }
 0x416   :  { %780 = dma.done.wait [#allocation4], 32  }
 0x417   :  { %781 = vsyncadd [#allocation4], 4294967264 }
 0x418   :  { %572 = vsyncpa [#allocation3], 1 }
 0x419   :  { %573 = vsyncpa [#allocation6], 1 }
 0x41a   :  { %574 = vsyncpa [#allocation9], 1 }
 0x41b   :  { %575 = vsyncpa [#allocation4], 1 }

</bundles_post_ra>
